<compile_context>
chip_gen: v7x
topology: tpu7x:2x2x1
jax: 0.10.0
libtpu: 0.0.40
codegen_flags: <defaults>
</compile_context>

<pallas_src>
import functools

import jax
import jax.numpy as jnp
from jax import lax
from jax.experimental import pallas as pl
from jax.experimental.pallas import tpu as pltpu


# --------------------------------------------------------------------------
# In-kernel helpers (native dtype; max is exact).
# --------------------------------------------------------------------------
def _max3_lanes(x, fill):
    """3-tap max along the last (lane) axis; out-of-image positions see `fill`."""
    pad = jnp.full(x.shape[:-1] + (1,), fill, x.dtype)
    left = jnp.concatenate([pad, x[..., :-1]], axis=-1)    # neighbour at w-1
    right = jnp.concatenate([x[..., 1:], pad], axis=-1)    # neighbour at w+1
    return jnp.maximum(jnp.maximum(left, x), right)


def _max3_rows(x, top, bot):
    """3-tap max along axis -2 (sublanes); `top`/`bot` are the (..,1,W) neighbour rows."""
    up = jnp.concatenate([top, x[..., :-1, :]], axis=-2)   # neighbour at h-1
    down = jnp.concatenate([x[..., 1:, :], bot], axis=-2)  # neighbour at h+1
    return jnp.maximum(jnp.maximum(up, x), down)


def _maxpool3x3_kernel(x_ref, o_ref, *, fill):
    """Whole image height in the block: all four borders use `fill`."""
    x = x_ref[0]                                      # (tc, H, W)
    mw = _max3_lanes(x, fill)                         # max along W (lanes)
    frow = jnp.full(x.shape[:-2] + (1, x.shape[-1]), fill, x.dtype)
    o_ref[0] = _max3_rows(mw, frow, frow)             # max along H (sublanes)


def _maxpool3x3_halo_kernel(x_ref, top_ref, bot_ref, o_ref, *, fill):
    """H-tiled block: rows above/below the tile arrive as 8-row halo chunks."""
    hi = pl.program_id(2)
    last = pl.num_programs(2) - 1
    x = x_ref[0]                                      # (tc, th, W)
    mw = _max3_lanes(x, fill)

    top = top_ref[0][:, 7:8, :]                       # row just above the tile
    bot = bot_ref[0][:, 0:1, :]                       # row just below the tile
    frow = jnp.full_like(top, fill)
    top = jnp.where(hi == 0, frow, top)               # image top: nothing above
    bot = jnp.where(hi == last, frow, bot)            # image bottom: nothing below
    o_ref[0] = _max3_rows(mw, _max3_lanes(top, fill), _max3_lanes(bot, fill))


# --------------------------------------------------------------------------
# Tiling
# --------------------------------------------------------------------------
def _divisors_desc(n):
    return [d for d in range(n, 0, -1) if n % d == 0]


def _pick_tiles(n, c, h, w, itemsize, vmem_cap):
    """Pick (tc, th): largest block within the generation's VMEM budget."""
    # ~6 MiB input block on 128 MiB parts (v5e/v6e), ~3.2 MiB on 64 MiB (v7x).
    # Live set ~= 2x input (double buffer) + 2x output + temporaries ~ 5-6x block.
    target = max(1 << 20, min(6 << 20, vmem_cap // 20))
    blk = lambda tc_, th_: tc_ * th_ * w * itemsize

    tc, th = c, h
    if blk(tc, th) > target:                          # tile C first (no halo cost)
        tc = 1
        for d in _divisors_desc(c):
            if blk(d, h) <= target:
                tc = d
                break
    if blk(tc, th) > target:                          # then tile H (1-row halo)
        h_divs = [d for d in _divisors_desc(h) if d % 8 == 0 and d < h]
        for d in h_divs:
            if blk(tc, d) <= target:
                th = d
                break
        else:
            if h_divs:
                th = h_divs[-1]                       # smallest valid tile, best effort

    # v7x has 2 TensorCores: make sure the (fully parallel) grid has >= 2 steps.
    if n * (c // tc) * (h // th) < 2:
        if c > 1:
            tc = next(d for d in _divisors_desc(c) if d < c)
        else:
            h_divs = [d for d in _divisors_desc(h) if d % 8 == 0 and d < h]
            if h_divs:
                th = h_divs[0]
    return tc, th


# --------------------------------------------------------------------------
# Wrapper
# --------------------------------------------------------------------------
@functools.partial(jax.jit, static_argnames=("k", "s", "p", "_tiles"))
def maxpool2d(x: jax.Array, k: int = 3, s: int = 1, p: int = 1, _tiles=None) -> jax.Array:
    """Matches torch.nn.MaxPool2d(3, 1, 1, ceil_mode=True) on NCHW input."""
    if (k, s, p) != (3, 1, 1):
        raise NotImplementedError("kernel is specialized to k=3, s=1, p=1")
    n, c, h, w = x.shape

    # ceil_mode output size (PyTorch rule); for k=3,s=1,p=1 it equals the input
    # size, which this kernel assumes.
    def _out_size(dim):
        o = -(-(dim + 2 * p - k) // s) + 1
        if (o - 1) * s >= dim + p:
            o -= 1
        return o

    assert (_out_size(h), _out_size(w)) == (h, w)

    if jnp.issubdtype(x.dtype, jnp.floating):
        fill = float("-inf")
    else:
        fill = int(jnp.iinfo(x.dtype).min)

    try:  # size blocks / vmem limit for the generation we are compiling for
        vmem_cap = int(pltpu.get_tpu_info().vmem_capacity_bytes)
    except Exception:
        vmem_cap = 64 << 20                           # conservative (v7x-sized) default

    itemsize = jnp.dtype(x.dtype).itemsize
    if _tiles is None:
        tc, th = _pick_tiles(n, c, h, w, itemsize, vmem_cap)
    else:
        tc, th = _tiles
    assert c % tc == 0 and (th == h or (h % th == 0 and th % 8 == 0))

    h_tiled = th < h
    grid = (n, c // tc, h // th)
    out_spec = pl.BlockSpec((1, tc, th, w), lambda ni, ci, hi: (ni, ci, hi, 0))

    if not h_tiled:
        kernel = functools.partial(_maxpool3x3_kernel, fill=fill)
        in_specs = [pl.BlockSpec((1, tc, h, w), lambda ni, ci, hi: (ni, ci, 0, 0))]
        args = (x,)
    else:
        # Halo rows: the row just above the tile is the last row of the 8-row
        # chunk ending at hi*th - 1; the row just below is the first row of the
        # chunk starting at (hi+1)*th.  Chunk indices are clamped at the image
        # border; the kernel replaces those (invalid) rows with `fill`.
        n_chunks = h // 8
        kernel = functools.partial(_maxpool3x3_halo_kernel, fill=fill)
        in_specs = [
            pl.BlockSpec((1, tc, th, w), lambda ni, ci, hi: (ni, ci, hi, 0)),
            pl.BlockSpec(
                (1, tc, 8, w),
                lambda ni, ci, hi: (ni, ci, jnp.maximum(hi * (th // 8) - 1, 0), 0)),
            pl.BlockSpec(
                (1, tc, 8, w),
                lambda ni, ci, hi: (ni, ci,
                                    jnp.minimum((hi + 1) * (th // 8), n_chunks - 1), 0)),
        ]
        args = (x, x, x)

    return pl.pallas_call(
        kernel,
        out_shape=jax.ShapeDtypeStruct((n, c, h, w), x.dtype),
        grid_spec=pltpu.PrefetchScalarGridSpec(
            num_scalar_prefetch=0,
            grid=grid,
            in_specs=in_specs,
            out_specs=out_spec,
        ),
        compiler_params=pltpu.CompilerParams(
            dimension_semantics=("parallel", "parallel", "parallel"),
            vmem_limit_bytes=int(min(vmem_cap // 2, 64 << 20)),
        ),
    )(*args)


# --------------------------------------------------------------------------
# Reference + self-test
# --------------------------------------------------------------------------
def _reference_maxpool(x, k=3, s=1, p=1):
    return lax.reduce_window(
        x, -jnp.inf, lax.max,
        window_dimensions=(1, 1, k, k),
        window_strides=(1, 1, s, s),
        padding=((0, 0), (0, 0), (p, p), (p, p)),
    )


if __name__ == "__main__":
    key = jax.random.PRNGKey(0)
    k1, k2 = jax.random.split(key)

    # Main check: module-sized input (batch=2, channels=4, 16x16), default tiling.
    x = jax.random.normal(k1, (2, 4, 16, 16), dtype=jnp.float32)
    y = jax.block_until_ready(maxpool2d(x))
    assert y.shape == (2, 4, 16, 16), y.shape
    assert jnp.allclose(y, _reference_maxpool(x)), "mismatch vs reference (main path)"

    # Also exercise the H-tiled halo path (used for large spatial maps / v7x fit).
    x2 = jax.random.normal(k2, (1, 2, 32, 128), dtype=jnp.float32)
    y2 = jax.block_until_ready(maxpool2d(x2, _tiles=(1, 16)))
    assert jnp.allclose(y2, _reference_maxpool(x2)), "mismatch vs reference (halo path)"

    print("KERNEL_OK")
</pallas_src>

<mosaic_0001>
module attributes {stable_mosaic.version = 11 : i64} {
  func.func @_maxpool3x3_kernel(%arg0: i32, %arg1: i32, %arg2: i32, %arg3: memref<1x4x16x16xf32, #tpu.memory_space<vmem>>, %arg4: memref<1x4x16x16xf32, #tpu.memory_space<vmem>>) attributes {dimension_semantics = [#tpu.dimension_semantics<parallel>, #tpu.dimension_semantics<parallel>, #tpu.dimension_semantics<parallel>], iteration_bounds = array<i64: 2, 1, 1>, scalar_prefetch = 0 : i64, scratch_operands = 0 : i64, tpu.core_type = #tpu.core_type<tc>, window_params = [{transform_indices = @transform_0, window_bounds = array<i64: 1, 4, 16, 16>}, {transform_indices = @transform_1, window_bounds = array<i64: 1, 4, 16, 16>}]} {
    %c0 = arith.constant 0 : index
    %c0_0 = arith.constant 0 : index
    %c0_1 = arith.constant 0 : index
    %c0_2 = arith.constant 0 : index
    %0 = vector.load %arg3[%c0, %c0_0, %c0_1, %c0_2] : memref<1x4x16x16xf32, #tpu.memory_space<vmem>>, vector<1x4x16x16xf32>
    %1 = vector.shape_cast %0 : vector<1x4x16x16xf32> to vector<4x16x16xf32>
    %cst = arith.constant 0xFF800000 : f32
    %2 = vector.broadcast %cst : f32 to vector<4x16x1xf32>
    %3 = vector.extract_strided_slice %1 {offsets = [0, 0, 0], sizes = [4, 16, 15], strides = [1, 1, 1]} : vector<4x16x16xf32> to vector<4x16x15xf32>
    %4 = tpu.concatenate %2, %3 in 2 : vector<4x16x1xf32>, vector<4x16x15xf32> -> vector<4x16x16xf32>
    %5 = vector.extract_strided_slice %1 {offsets = [0, 0, 1], sizes = [4, 16, 15], strides = [1, 1, 1]} : vector<4x16x16xf32> to vector<4x16x15xf32>
    %6 = tpu.concatenate %5, %2 in 2 : vector<4x16x15xf32>, vector<4x16x1xf32> -> vector<4x16x16xf32>
    %7 = arith.maximumf %4, %1 : vector<4x16x16xf32>
    %8 = arith.maximumf %7, %6 : vector<4x16x16xf32>
    %cst_3 = arith.constant 0xFF800000 : f32
    %9 = vector.broadcast %cst_3 : f32 to vector<4x1x16xf32>
    %10 = vector.extract_strided_slice %8 {offsets = [0, 0, 0], sizes = [4, 15, 16], strides = [1, 1, 1]} : vector<4x16x16xf32> to vector<4x15x16xf32>
    %11 = tpu.concatenate %9, %10 in 1 : vector<4x1x16xf32>, vector<4x15x16xf32> -> vector<4x16x16xf32>
    %12 = vector.extract_strided_slice %8 {offsets = [0, 1, 0], sizes = [4, 15, 16], strides = [1, 1, 1]} : vector<4x16x16xf32> to vector<4x15x16xf32>
    %13 = tpu.concatenate %12, %9 in 1 : vector<4x15x16xf32>, vector<4x1x16xf32> -> vector<4x16x16xf32>
    %14 = arith.maximumf %11, %8 : vector<4x16x16xf32>
    %15 = arith.maximumf %14, %13 : vector<4x16x16xf32>
    %c0_4 = arith.constant 0 : index
    %c0_5 = arith.constant 0 : index
    %c0_6 = arith.constant 0 : index
    %c0_7 = arith.constant 0 : index
    %16 = vector.load %arg4[%c0_4, %c0_5, %c0_6, %c0_7] : memref<1x4x16x16xf32, #tpu.memory_space<vmem>>, vector<1x4x16x16xf32>
    %17 = vector.shape_cast %16 : vector<1x4x16x16xf32> to vector<4x16x16xf32>
    %18 = vector.shape_cast %15 : vector<4x16x16xf32> to vector<1x4x16x16xf32>
    tpu.vector_store %arg4[%c0_4, %c0_5, %c0_6, %c0_7], %18 {strides = array<i32>} : memref<1x4x16x16xf32, #tpu.memory_space<vmem>>, vector<1x4x16x16xf32>,
    return
  }
  func.func @transform_0(%arg0: i32, %arg1: i32, %arg2: i32) -> (i32, i32, i32, i32) {
    %c0_i32 = arith.constant 0 : i32
    %c0_i32_0 = arith.constant 0 : i32
    %c0_i32_1 = arith.constant 0 : i32
    return %arg0, %arg1, %c0_i32, %c0_i32_0 : i32, i32, i32, i32
  }
  func.func @transform_1(%arg0: i32, %arg1: i32, %arg2: i32) -> (i32, i32, i32, i32) {
    %c0_i32 = arith.constant 0 : i32
    %c0_i32_0 = arith.constant 0 : i32
    return %arg0, %arg1, %arg2, %c0_i32 : i32, i32, i32, i32
  }
}

</mosaic_0001>

<bundles_post_ra>
// kernel: maxpool2d.1
= control target key start
LH: loop header
LB: loop body
LE: loop exit
PB: predicated region body
PF: predicated region fallthrough
CT: control target
= control target key end

     0   :  { %6 = vsyncpa [#allocation3], 0  ;;  %s935_s0 = inlined_call_operand.hbm [shape: f32[2,4,16,16], index: 0, kind: input, shape index: {}]   ;;  %s936_s1 = inlined_call_operand.hbm [shape: f32[2,4,16,16], index: 1, kind: output, shape index: {}]  }
   0x1   :  { %8 = vsyncpa [#allocation3 + $0x1], 0 }
   0x2   :  { %9 = vsyncpa [#allocation4], 0 }
   0x3   :  { %11 = vsyncpa [#allocation4 + $0x1], 0  ;;  %s675_s6 = smov 0   ;;  %s677_s7 = smov 0  }
   0x4   :  { %s679_s8 = smov 0   ;;  %s681_s9 = smov 0  }
   0x5   :  { %s683_s10 = smov 0   ;;  %s685_s11 = smov 0  }
   0x6 LB: > { %s458_s12 = sadd.s32 4294967295, %s655_s11   ;;  %s459_s13 = sadd.s32 4294967294, %s655_s11   ;;  %s655_s11 = sphi %s685_s11, %s17_s11   ;;  %s651_s10 = sphi %s683_s10, %s951_s10   ;;  %s647_s9 = sphi %s681_s9, %s950_s9   ;;  %s643_s8 = sphi %s679_s8, %s949_s8   ;;  %s639_s7 = sphi %s677_s7, %s948_s7   ;;  %s635_s6 = sphi %s675_s6, %s947_s6  }
   0x7   : > { %s36_s14 = sadd.s32 1, %s651_s10  ;;  %s45_s15 = sadd.s32 1, %s643_s8 }
   0x8   : > { %p38_p0 = scmp.ge.s32.totalorder %s36_s14, 2  ;;  %p52_p1 = scmp.ne.s32.totalorder %s643_s8, %s639_s7 }
   0x9   : > { %p53_p2 = scmp.eq.s32.totalorder %s655_s11, 0  ;;  %p58_p3 = scmp.ne.s32.totalorder %s639_s7, %s635_s6 }
   0xa   : > { %s953_s14 = smov (%p38_p0, %s36_s14), 0  ;;  %p59_p5 = scmp.eq.s32.totalorder %s458_s12, 0 }
   0xb   : > { %p716_p4 = por %p53_p2, %p52_p1  ;;  %s40_s17 = ssub.s32 %s651_s10, %s953_s14 }
   0xc   : > { %p86_p6 = scmp.eq.s32.totalorder %s458_s12, 1  ;;  %p43_p7 = scmp.eq.s32.totalorder %s40_s17, 0 }
   0xd   : > { %p722_p8 = por %p59_p5, %p58_p3  ;;  %p92_p10 = scmp.eq.s32.totalorder %s459_s13, 1 }
   0xe   : > { %p726_p9 = por %p86_p6, %p52_p1  ;;  %p487_p13 = scmp.lt.s32.totalorder %s655_s11, 2 }
   0xf   : > { %s731_s20 = scalar_select %p43_p7, %s643_s8, %s45_s15  }
  0x10   : > { %s940_s19 = scalar_select %p726_p9, 1, 0 }
  0x11   : > { %p733_p11 = por %p92_p10, %p58_p3  ;;  %s112_s22 = sand.u32 1, %s643_s8  }
  0x12   : > { %s462_s23 = sshll.u32 %s112_s22, 6  ;;  %s473_s24 = sshll.u32 %s651_s10, 10 }
  0x13   : > { %s941_s21 = scalar_select %p733_p11, 1, 0 }
  0x14   : > { %s744_s27 = scalar_lea.hbm %s935_s0, %s473_s24  ;;  %s116_s28 = scalar_lea.vmem [#allocation2], %s462_s23 }
  0x15   : > { %s126_s29 = sshll.u32 %s116_s28, 4  ;;  %p750_p0 = pnand %p487_p13, %p716_p4  ;;  %s746_s29 = int_to_ptr.vmem [resolvable:$true] %s126_s29 }
  0x16   : > { %s755_s2 = scalar_lea.sflag [#allocation3], %s112_s22  ;;  %s543_s3 = scalar_lea.hbm %s744_s27, 1024 }
  0x17   : > { %p544_p2 = scmp.ne.s32.totalorder %s744_s27, %s543_s3  ;;  %p545_p3 = pneg %p750_p0 }
  0x18   : > { %s548_s12 = scalar_lea.hbm %s935_s0, 2048  ;;  %p549_p4 = scmp.lt.u32.totalorder %s744_s27, %s935_s0 }
  0x19   : > { %p546_p5 = pnand %p545_p3, %p544_p2  ;;  %p550_p7 = scmp.lt.u32.totalorder %s548_s12, %s543_s3 }
  0x1a   : > { %p552_p13 = scmp.lt.u32.totalorder %s543_s3, %s744_s27 }
  0x1b   : > { %p547_p6 = pneg %p546_p5  ;;  %p551_p10 = por %p550_p7, %p549_p4 }
  0x1d   : > { %p553_p12 = por %p552_p13, %p551_p10 }
  0x1f   : > { %p554_p1 = pnand %p553_p12, %p547_p6 }
  0x21   : > { %557 = shalt.err (!%p554_p1)
}
  0x22   : > { %s558_s16 = scalar_lea.vmem %s746_s29, 1024  ;;  %s657_s17 = smov [#allocation2]  }
  0x23   : > { %p559_p2 = scmp.ne.s32.totalorder %s746_s29, %s558_s16  ;;  %s563_s22 = sshll.u32 %s657_s17, 4  ;;  %s564_s22 = int_to_ptr.vmem [resolvable:$false] %s563_s22 }
  0x24   : > { %s565_s23 = scalar_lea.vmem %s564_s22, 2048  ;;  %p566_p9 = scmp.lt.s32.totalorder %s746_s29, %s564_s22 }
  0x25   : > { %p561_p5 = pnand %p559_p2, %p545_p3  ;;  %p567_p4 = scmp.lt.s32.totalorder %s565_s23, %s558_s16 }
  0x27   : > { %p562_p11 = pneg %p561_p5  ;;  %p568_p7 = por %p567_p4, %p566_p9 }
  0x29   : > { %p569_p10 = pnand %p568_p7, %p562_p11 }
  0x2b   : > { %572 = shalt.err (!%p569_p10)
}
  0x2c   : > { %s658_s24 = smov 128   ;;  %s659_s25 = smov 8  }
  0x2d   : > { %482 = dma.hbm_to_vmem [thread:$0]  (!%p750_p0), %s744_s27, 1024, %s746_s29, %s755_s2, %s658_s24, %s658_s24, %s659_s25  }
  0x2e   : > { %p134_p12 = scmp.lt.s32.totalorder %s655_s11, 3  ;;  %p943_p1 = scmp.ge.s32.totalorder %s655_s11, 1 }
  0x30   : > { %p135_p3 = pnand %p943_p1, %p134_p12 }
  0x31   : > { %s787_s26 = sand.u32 (!%p135_p3), 1, %s639_s7  }
  0x32   : > { %138 = sbr.rel (%p135_p3) target bundleno = 228 (0xe4), region = 24  ;;  %s466_s28 = sshll.u32 (!%p135_p3), %s787_s26, 6 }
  0x33   : > { %s141_s3 = scalar_lea.sflag (!%p135_p3), [#allocation3], %s787_s26  ;;  %s144_s4 = scalar_lea.vmem (!%p135_p3), [#allocation2], %s466_s28 }
  0x39   : > { %626 = dma.done.wait (%p722_p8), %s141_s3, 1024  }
  0x3a   : > { %628 = vsyncadd (%p722_p8), %s141_s3, 4294966272  ;;  %v797_v0 = vld [vmem:[%s144_s4 + $0x10] sm:$0xff]  ;;  %v166_v1 = vld [vmem:[%s144_s4] sm:$0xff]  ;;  %s660_s27 = smov 1   ;;  %s661_s18 = smov 127   ;;  %vm206_vm0 = vcmask 7168  }
  0x3b   : > { %186 = vrot.lane.b32.xlu1 %v797_v0, %s660_s27  ;;  %182 = vrot.lane.b32.xlu0 %v166_v1, %s660_s27  ;;  %v800_v2 = vld [vmem:[%s144_s4 + $0x18] sm:$0xff]  ;;  %v167_v3 = vld [vmem:[%s144_s4 + $0x8] sm:$0xff]  ;;  %vm239_vm1 = vcmask 121856   ;;  %vm297_vm2 = vcmask 1046528   ;;  %vm272_vm3 = vcmask 1040384   ;;  %vm338_vm4 = vcmask 130048  }
  0x3c   : > { %v803_v4 = vld [vmem:[%s144_s4 + $0x28] sm:$0xff]  ;;  %v805_v5 = vld [vmem:[%s144_s4 + $0x20] sm:$0xff]  ;;  %v809_v6 = vld [vmem:[%s144_s4 + $0x38] sm:$0xff]  ;;  %s847_s29 = scalar_lea.vmem [#allocation5], %s466_s28  ;;  %s474_s30 = sshll.u32 %s647_s9, 10 }
  0x3d   : > { %v811_v7 = vld [vmem:[%s144_s4 + $0x30] sm:$0xff]  ;;  %s366_s2 = sshll.u32 %s847_s29, 4  ;;  %s880_s9 = scalar_lea.hbm %s936_s1, %s474_s30  ;;  %s882_s2 = int_to_ptr.vmem [resolvable:$true] %s366_s2 }
  0x3e   : > { %s348_s13 = scalar_lea.sflag [#allocation4], %s787_s26  ;;  %s573_s15 = scalar_lea.vmem %s882_s2, 1024 }
  0x3f   : > { %188 = vrot.lane.b32.xlu1 %v800_v2, %s660_s27  ;;  %184 = vrot.lane.b32.xlu0 %v167_v3, %s660_s27  ;;  %p574_p8 = scmp.ne.s32.totalorder %s882_s2, %s573_s15  ;;  %p944_p9 = scmp.ne.s32.totalorder %s940_s19, 0 }
  0x40   : > { %s662_s16 = smov [#allocation5]  }
  0x41   : > { %p575_p11 = pnand %p574_p8, %p944_p9  ;;  %s577_s17 = sshll.u32 %s662_s16, 4  ;;  %s578_s17 = int_to_ptr.vmem [resolvable:$false] %s577_s17 }
  0x42   : > { %s579_s22 = scalar_lea.vmem %s578_s17, 2048  ;;  %p580_p6 = scmp.lt.s32.totalorder %s882_s2, %s578_s17 }
  0x43   : > { %192 = vrot.lane.b32.xlu1 %v803_v4, %s660_s27  ;;  %190 = vrot.lane.b32.xlu0 %v805_v5, %s660_s27  ;;  %p576_p0 = pneg %p575_p11  ;;  %p581_p13 = scmp.lt.s32.totalorder %s579_s22, %s573_s15 }
  0x45   : > { %p582_p2 = por %p581_p13, %p580_p6 }
  0x47   : > { %196 = vrot.lane.b32.xlu1 %v809_v6, %s660_s27  ;;  %194 = vrot.lane.b32.xlu0 %v811_v7, %s660_s27  ;;  %p583_p5 = pnand %p582_p2, %p576_p0 }
  0x4b   : > { %217 = vrot.lane.b32.xlu1 %v167_v3, %s661_s18  ;;  %215 = vrot.lane.b32.xlu0 %v166_v1, %s661_s18 }
  0x4f   : > { %221 = vrot.lane.b32.xlu1 %v800_v2, %s661_s18  ;;  %219 = vrot.lane.b32.xlu0 %v797_v0, %s661_s18 }
  0x53   : > { %225 = vrot.lane.b32.xlu1 %v803_v4, %s661_s18  ;;  %223 = vrot.lane.b32.xlu0 %v805_v5, %s661_s18 }
  0x57   : > { %229 = vrot.lane.b32.xlu1 %v809_v6, %s661_s18  ;;  %227 = vrot.lane.b32.xlu0 %v811_v7, %s661_s18 }
  0xad   : > { %v187_v8 = vpop.permute.xlu1 %186  ;;  %v183_v9 = vpop.permute.xlu0 %182 }
  0xae   : > { %v207_v16 = vsel %vm206_vm0, -inf, %v183_v9  ;;  %v209_v24 = vsel %vm206_vm0, -inf, %v187_v8 }
  0xaf   : > { %v248_v18 = vmax.f32 %v207_v16, %v166_v1  ;;  %v250_v36 = vmax.f32 %v209_v24, %v797_v0 }
  0xb1   : > { %v189_v10 = vpop.permute.xlu1 %188  ;;  %v185_v11 = vpop.permute.xlu0 %184 }
  0xb2   : > { %v208_v17 = vsel %vm206_vm0, -inf, %v185_v11  ;;  %v210_v25 = vsel %vm206_vm0, -inf, %v189_v10 }
  0xb3   : > { %v249_v19 = vmax.f32 %v208_v17, %v167_v3  ;;  %v251_v37 = vmax.f32 %v210_v25, %v800_v2 }
  0xb5   : > { %v193_v12 = vpop.permute.xlu1 %192  ;;  %v191_v13 = vpop.permute.xlu0 %190 }
  0xb6   : > { %v212_v28 = vsel %vm206_vm0, -inf, %v193_v12  ;;  %v211_v29 = vsel %vm206_vm0, -inf, %v191_v13 }
  0xb7   : > { %v253_v40 = vmax.f32 %v212_v28, %v803_v4  ;;  %v252_v41 = vmax.f32 %v211_v29, %v805_v5 }
  0xb9   : > { %v197_v14 = vpop.permute.xlu1 %196  ;;  %v195_v15 = vpop.permute.xlu0 %194 }
  0xba   : > { %v214_v48 = vsel %vm206_vm0, -inf, %v197_v14  ;;  %v213_v49 = vsel %vm206_vm0, -inf, %v195_v15 }
  0xbb   : > { %v255_v62 = vmax.f32 %v214_v48, %v809_v6  ;;  %v254_v63 = vmax.f32 %v213_v49, %v811_v7 }
  0xbd   : > { %v218_v20 = vpop.permute.xlu1 %217  ;;  %v216_v21 = vpop.permute.xlu0 %215 }
  0xbe   : > { %v241_v22 = vsel %vm239_vm1, %v218_v20, -inf  ;;  %v240_v23 = vsel %vm239_vm1, %v216_v21, -inf }
  0xbf   : > { %v257_v26 = vmax.f32 %v249_v19, %v241_v22  ;;  %v256_v27 = vmax.f32 %v248_v18, %v240_v23 }
  0xc1   : > { %v274_v30 = vrot.slane %v257_v26, 7  ;;  %v299_v31 = vrot.slane %v257_v26, 1  ;;  %v273_v32 = vrot.slane %v256_v27, 7  ;;  %v298_v33 = vrot.slane %v256_v27, 1  ;;  %v222_v34 = vpop.permute.xlu1 %221  ;;  %v220_v35 = vpop.permute.xlu0 %219 }
  0xc2   : > { %v243_v38 = vsel %vm239_vm1, %v222_v34, -inf  ;;  %v242_v39 = vsel %vm239_vm1, %v220_v35, -inf }
  0xc3   : > { %v275_v42 = vsel %vm272_vm3, %v273_v32, %v274_v30  ;;  %v293_v43 = vsel %vm272_vm3, -inf, %v273_v32  ;;  %v259_v46 = vmax.f32 %v251_v37, %v243_v38  ;;  %v258_v47 = vmax.f32 %v250_v36, %v242_v39 }
  0xc4   : > { %v322_v44 = vmax.f32 %v293_v43, %v256_v27  ;;  %v323_v45 = vmax.f32 %v275_v42, %v257_v26  ;;  %v318_v50 = vsel %vm297_vm2, %v299_v31, -inf  ;;  %v300_v51 = vsel %vm297_vm2, %v298_v33, %v299_v31 }
  0xc5   : > { %v226_v52 = vpop.permute.xlu1 %225  ;;  %v224_v53 = vpop.permute.xlu0 %223  ;;  %v277_v56 = vrot.slane %v259_v46, 7  ;;  %v302_v57 = vrot.slane %v259_v46, 1  ;;  %v276_v58 = vrot.slane %v258_v47, 7  ;;  %v301_v59 = vrot.slane %v258_v47, 1 }
  0xc6   : > { %v330_v54 = vmax.f32 %v322_v44, %v300_v51  ;;  %v331_v55 = vmax.f32 %v323_v45, %v318_v50  ;;  %v245_v60 = vsel %vm239_vm1, %v226_v52, -inf  ;;  %v244_v61 = vsel %vm239_vm1, %v224_v53, -inf }
  0xc7   : > { %v261_v0 = vmax.f32 %v253_v40, %v245_v60  ;;  %v260_v1 = vmax.f32 %v252_v41, %v244_v61  ;;  %v319_v2 = vsel %vm297_vm2, %v302_v57, -inf  ;;  %v278_v3 = vsel %vm272_vm3, %v276_v58, %v277_v56 }
  0xc8   : > { %339 = vst.msk [vmem:[%s847_s29] sm:$0xff] %vm338_vm4, %v330_v54  ;;  %340 = vst.msk [vmem:[%s847_s29 + $0x8] sm:$0xff] %vm338_vm4, %v331_v55  ;;  %v294_v4 = vsel %vm272_vm3, -inf, %v276_v58  ;;  %v303_v5 = vsel %vm297_vm2, %v301_v59, %v302_v57  ;;  %v325_v9 = vmax.f32 %v278_v3, %v259_v46 }
  0xc9   : > { %v230_v6 = vpop.permute.xlu1 %229  ;;  %v228_v7 = vpop.permute.xlu0 %227  ;;  %v324_v8 = vmax.f32 %v294_v4, %v258_v47  ;;  %v280_v10 = vrot.slane %v261_v0, 7  ;;  %v305_v11 = vrot.slane %v261_v0, 1  ;;  %v279_v12 = vrot.slane %v260_v1, 7 }
  0xca   : > { %v304_v13 = vrot.slane %v260_v1, 1  ;;  %v247_v14 = vsel %vm239_vm1, %v230_v6, -inf  ;;  %v246_v15 = vsel %vm239_vm1, %v228_v7, -inf  ;;  %v333_v17 = vmax.f32 %v325_v9, %v319_v2 }
  0xcb   : > { %v332_v16 = vmax.f32 %v324_v8, %v303_v5  ;;  %v263_v18 = vmax.f32 %v255_v62, %v247_v14  ;;  %v281_v19 = vsel %vm272_vm3, %v279_v12, %v280_v10  ;;  %v295_v20 = vsel %vm272_vm3, -inf, %v279_v12 }
  0xcc   : > { %v262_v21 = vmax.f32 %v254_v63, %v246_v15  ;;  %342 = vst.msk [vmem:[%s847_s29 + $0x18] sm:$0xff] %vm338_vm4, %v333_v17  ;;  %v320_v22 = vsel %vm297_vm2, %v305_v11, -inf  ;;  %v326_v23 = vmax.f32 %v295_v20, %v260_v1  ;;  %v327_v24 = vmax.f32 %v281_v19, %v261_v0 }
  0xcd   : > { %341 = vst.msk [vmem:[%s847_s29 + $0x10] sm:$0xff] %vm338_vm4, %v332_v16  ;;  %v283_v25 = vrot.slane %v263_v18, 7  ;;  %v306_v26 = vsel %vm297_vm2, %v304_v13, %v305_v11  ;;  %v308_v27 = vrot.slane %v263_v18, 1 }
  0xce   : > { %v282_v28 = vrot.slane %v262_v21, 7  ;;  %v307_v29 = vrot.slane %v262_v21, 1  ;;  %v334_v30 = vmax.f32 %v326_v23, %v306_v26  ;;  %v335_v31 = vmax.f32 %v327_v24, %v320_v22 }
  0xcf   : > { %v321_v36 = vsel %vm297_vm2, %v308_v27, -inf }
  0xd0   : > { %v284_v32 = vsel %vm272_vm3, %v282_v28, %v283_v25  ;;  %v296_v33 = vsel %vm272_vm3, -inf, %v282_v28  ;;  %343 = vst.msk [vmem:[%s847_s29 + $0x20] sm:$0xff] %vm338_vm4, %v334_v30  ;;  %344 = vst.msk [vmem:[%s847_s29 + $0x28] sm:$0xff] %vm338_vm4, %v335_v31  ;;  %v309_v37 = vsel %vm297_vm2, %v307_v29, %v308_v27 }
  0xd1   : > { %v328_v34 = vmax.f32 %v296_v33, %v262_v21  ;;  %v329_v35 = vmax.f32 %v284_v32, %v263_v18 }
  0xd3   : > { %v336_v38 = vmax.f32 %v328_v34, %v309_v37  ;;  %v337_v39 = vmax.f32 %v329_v35, %v321_v36 }
  0xd5   : > { %345 = vst.msk [vmem:[%s847_s29 + $0x30] sm:$0xff] %vm338_vm4, %v336_v38  ;;  %346 = vst.msk [vmem:[%s847_s29 + $0x38] sm:$0xff] %vm338_vm4, %v337_v39 }
  0xd6   : > { %586 = shalt.err (!%p583_p5)
}
  0xd7   : > { %s587_s23 = scalar_lea.hbm %s880_s9, 1024  ;;  %s591_s28 = scalar_lea.hbm %s936_s1, 2048 }
  0xd8   : > { %p588_p4 = scmp.ne.s32.totalorder %s880_s9, %s587_s23  ;;  %p592_p12 = scmp.lt.u32.totalorder %s880_s9, %s936_s1 }
  0xd9   : > { %p593_p1 = scmp.lt.u32.totalorder %s591_s28, %s587_s23  ;;  %p595_p8 = scmp.lt.u32.totalorder %s587_s23, %s880_s9 }
  0xda   : > { %p589_p7 = pnand %p588_p4, %p944_p9 }
  0xdb   : > { %p594_p3 = por %p593_p1, %p592_p12 }
  0xdc   : > { %p590_p10 = pneg %p589_p7 }
  0xdd   : > { %p596_p11 = por %p595_p8, %p594_p3 }
  0xdf   : > { %p597_p0 = pnand %p596_p11, %p590_p10 }
  0xe1   : > { %600 = shalt.err (!%p597_p0)
}
  0xe2   : > { %s663_s27 = smov 128   ;;  %s664_s18 = smov 8  }
  0xe3   : > { %477 = dma.vmem_to_hbm [thread:$0]  (%p944_p9), %s882_s2, 1024, %s880_s9, %s348_s13, %s663_s27, %s663_s27, %s664_s18  }
  0xe4 PF: > { %s381_s29 = sand.u32 1, %s635_s6   ;;  %p945_p6 = scmp.ne.s32.totalorder %s941_s21, 0 }
  0xe5   : > { %p946_p13 = scmp.ge.s32.totalorder %s655_s11, 2  ;;  %s382_s30 = scalar_lea.sflag [#allocation4], %s381_s29 }
  0xe7   : > { %p484_p2 = pnand %p946_p13, %p945_p6 }
  0xe9   : > { %630 = dma.done.wait (!%p484_p2), %s382_s30, 1024  }
  0xea   : > { %632 = vsyncadd (!%p484_p2), %s382_s30, 4294966272  ;;  %s17_s11 = sadd.s32 1, %s655_s11   ;;  %s947_s6 = smov %s639_s7 }
  0xeb   : > { %p14_p5 = scmp.ge.s32.totalorder %s17_s11, 4   ;;  %s948_s7 = smov %s643_s8 }
  0xec   : > { %s949_s8 = smov %s731_s20  ;;  %s950_s9 = smov %s651_s10 }
  0xed   : > { %s951_s10 = smov %s953_s14  ;;  %16 = sbr.rel (!%p14_p5) target bundleno = 6 (0x6), region = 69 }
  0xf4   :  { %387 = vsyncpa [#allocation3], 1 }
  0xf5   :  { %389 = vsyncpa [#allocation3 + $0x1], 1 }
  0xf6   :  { %390 = vsyncpa [#allocation4], 1 }
  0xf7   :  { %392 = vsyncpa [#allocation4 + $0x1], 1 }

</bundles_post_ra>
